<compile_context>
chip_gen: v7x
topology: tpu7x:2x2x1
jax: 0.10.0
libtpu: 0.0.40
codegen_flags: <defaults>
</compile_context>

<pallas_src>
import functools

import jax
import jax.numpy as jnp
from jax.experimental import pallas as pl
from jax.experimental.pallas import tpu as pltpu

LANE = 128                       # vreg lane width
_TARGET_BLOCK_BYTES = 1 << 20    # ~1 MiB per block (>=512 KiB is near roofline)


def _sublane_min(dtype):
    """Minimum legal sublane multiple for a dtype (8 f32, 16 bf16, 32 int8)."""
    itemsize = jnp.dtype(dtype).itemsize
    return max(8, 32 // max(1, itemsize))


def _pick_lane_width(n):
    """Widest lane-dense last dim (multiple of 128) that divides n, or None."""
    for w in (2048, 1024, 512, 256, 128):
        if n % w == 0:
            return w
    return None


def _block_rows(rows, w, dtype):
    """Pick a row-block size: full extent if small, else multiple of sublane min,
    targeting ~_TARGET_BLOCK_BYTES per block."""
    itemsize = jnp.dtype(dtype).itemsize
    sub = _sublane_min(dtype)
    target_rows = max(sub, _TARGET_BLOCK_BYTES // (w * itemsize))
    if rows <= target_rows:
        return rows                      # full extent is always legal
    return (target_rows // sub) * sub    # multiple of the sublane minimum


# ----------------------------------------------------------------------------
# Fused path: one pallas_call scales both head and errors.
# ----------------------------------------------------------------------------
def _fused_scale_kernel(head_ref, err_ref, head_out_ref, err_out_ref, *, scale):
    # head block index depends only on grid axis 0 -> it is resident across
    # axis 1; write it once per row-block (j == 0), Pallas writes it back when
    # the row-block changes (standard accumulator/residency pattern).
    @pl.when(pl.program_id(1) == 0)
    def _():
        head_out_ref[...] = head_ref[...] * scale

    err_out_ref[...] = err_ref[...] * scale


def _scale_fused(head, errors, scale):
    dtype = head.dtype
    itemsize = jnp.dtype(dtype).itemsize

    n_h = head.size
    w = _pick_lane_width(n_h)
    rows_h = n_h // w
    K = errors.shape[0]

    head2d = head.reshape(rows_h, w)
    err3d = errors.reshape(K, rows_h, w)

    bh = _block_rows(rows_h, w, dtype)
    # K-chunk size so the errors block stays ~_TARGET_BLOCK_BYTES.
    kb = max(1, min(K, _TARGET_BLOCK_BYTES // (bh * w * itemsize)))

    grid = (pl.cdiv(rows_h, bh), pl.cdiv(K, kb))

    head_out2d, err_out3d = pl.pallas_call(
        functools.partial(_fused_scale_kernel, scale=scale),
        out_shape=(
            jax.ShapeDtypeStruct((rows_h, w), dtype),
            jax.ShapeDtypeStruct((K, rows_h, w), errors.dtype),
        ),
        grid=grid,
        in_specs=[
            pl.BlockSpec((bh, w), lambda i, j: (i, 0)),
            pl.BlockSpec((kb, bh, w), lambda i, j: (j, i, 0)),
        ],
        out_specs=(
            pl.BlockSpec((bh, w), lambda i, j: (i, 0)),
            pl.BlockSpec((kb, bh, w), lambda i, j: (j, i, 0)),
        ),
        input_output_aliases={0: 0, 1: 1},
        compiler_params=pltpu.CompilerParams(
            dimension_semantics=("parallel", "arbitrary")),
    )(head2d, err3d)

    return head_out2d.reshape(head.shape), err_out3d.reshape(errors.shape)


# ----------------------------------------------------------------------------
# Generic single-array fallback (used only when the fused preconditions fail).
# ----------------------------------------------------------------------------
def _scale_kernel(x_ref, o_ref, *, scale):
    o_ref[...] = x_ref[...] * scale


def _scale_array(x, scale):
    orig_shape = x.shape
    dtype = x.dtype

    n = x.size
    flat = x.reshape(-1)
    w = _pick_lane_width(n)
    pad = 0
    if w is None:
        # Uncommon path: element count not divisible by 128 -> pad + slice.
        w = LANE
        pad = (-n) % w
        flat = jnp.pad(flat, (0, pad))
    rows = flat.size // w
    x2d = flat.reshape(rows, w)

    br = _block_rows(rows, w, dtype)
    grid = (pl.cdiv(rows, br),)

    out2d = pl.pallas_call(
        functools.partial(_scale_kernel, scale=scale),
        out_shape=jax.ShapeDtypeStruct((rows, w), dtype),
        grid=grid,
        in_specs=[pl.BlockSpec((br, w), lambda i: (i, 0))],
        out_specs=pl.BlockSpec((br, w), lambda i: (i, 0)),
        input_output_aliases={0: 0},
        compiler_params=pltpu.CompilerParams(
            dimension_semantics=("parallel",)),
    )(x2d)

    out = out2d.reshape(-1)
    if pad:
        out = out[:n]
    return out.reshape(orig_shape)


def _relaxed_scale_fwd(curr_head, curr_errors, *, scale):
    if (curr_errors.ndim == curr_head.ndim + 1
            and curr_errors.shape[1:] == curr_head.shape
            and curr_errors.dtype == curr_head.dtype
            and curr_head.size > 0
            and _pick_lane_width(curr_head.size) is not None):
        return _scale_fused(curr_head, curr_errors, scale)
    # Fallback: two well-tiled launches.
    return _scale_array(curr_head, scale), _scale_array(curr_errors, scale)


class RelaxedScale:
    """JAX/Pallas equivalent of the PyTorch RelaxedScale module."""

    def __init__(self, scale):
        # In the PyTorch code `scale` comes from the wrapped layer; here it is
        # a fixed Python constant closed over by the kernel.
        self.scale = float(scale)
        self.bounds = None  # mirrors RelaxedLayer.bounds (metadata only)
        self._fwd = jax.jit(
            functools.partial(_relaxed_scale_fwd, scale=self.scale))

    def __call__(self, curr_head, curr_errors):
        return self._fwd(curr_head, curr_errors)


if __name__ == "__main__":
    key = jax.random.PRNGKey(0)
    k_head, k_err = jax.random.split(key)

    # Shapes consistent with the abstract-interpretation (zonotope) use:
    #   head:   (N, C, H, W) = (2, 4, 16, 16)
    #   errors: (K, N, C, H, W) = (8, 2, 4, 16, 16)
    curr_head = jax.random.normal(k_head, (2, 4, 16, 16), dtype=jnp.float32)
    curr_errors = jax.random.normal(k_err, (8, 2, 4, 16, 16), dtype=jnp.float32)

    scale = 0.5  # deterministic "layer.scale" parameter
    mod = RelaxedScale(scale)

    # Reference (== PyTorch semantics), computed before the kernel runs.
    ref_head = curr_head * scale
    ref_errors = curr_errors * scale

    out_head, out_errors = mod(curr_head, curr_errors)
    out_head = jax.block_until_ready(out_head)
    out_errors = jax.block_until_ready(out_errors)

    assert out_head.shape == curr_head.shape
    assert out_errors.shape == curr_errors.shape
    assert jnp.allclose(out_head, ref_head, atol=1e-6, rtol=1e-6)
    assert jnp.allclose(out_errors, ref_errors, atol=1e-6, rtol=1e-6)

    print("KERNEL_OK")
</pallas_src>

<mosaic_0001>
module attributes {stable_mosaic.version = 11 : i64} {
  func.func @_fused_scale_kernel(%arg0: i32, %arg1: i32, %arg2: memref<1x2048xf32, #tpu.memory_space<vmem>>, %arg3: memref<8x1x2048xf32, #tpu.memory_space<vmem>>, %arg4: memref<1x2048xf32, #tpu.memory_space<vmem>>, %arg5: memref<8x1x2048xf32, #tpu.memory_space<vmem>>) attributes {dimension_semantics = [#tpu.dimension_semantics<parallel>, #tpu.dimension_semantics<arbitrary>], iteration_bounds = array<i64: 1, 1>, scalar_prefetch = 0 : i64, scratch_operands = 0 : i64, tpu.core_type = #tpu.core_type<tc>, window_params = [{transform_indices = @transform_0, window_bounds = array<i64: 1, 2048>}, {transform_indices = @transform_1, window_bounds = array<i64: 8, 1, 2048>}, {transform_indices = @transform_2, window_bounds = array<i64: 1, 2048>}, {transform_indices = @transform_3, window_bounds = array<i64: 8, 1, 2048>}]} {
    %c0_i32 = arith.constant 0 : i32
    %0 = arith.cmpi eq, %arg1, %c0_i32 : i32
    %1 = arith.extui %0 : i1 to i32
    %c0_i32_0 = arith.constant 0 : i32
    %2 = arith.cmpi ne, %1, %c0_i32_0 : i32
    scf.if %2 {
      %c0_6 = arith.constant 0 : index
      %c0_7 = arith.constant 0 : index
      %7 = vector.load %arg2[%c0_6, %c0_7] : memref<1x2048xf32, #tpu.memory_space<vmem>>, vector<1x2048xf32>
      %cst_8 = arith.constant 5.000000e-01 : f32
      %8 = vector.broadcast %cst_8 : f32 to vector<1x2048xf32>
      %9 = arith.mulf %7, %8 : vector<1x2048xf32>
      %c0_9 = arith.constant 0 : index
      %c0_10 = arith.constant 0 : index
      %10 = vector.load %arg4[%c0_9, %c0_10] : memref<1x2048xf32, #tpu.memory_space<vmem>>, vector<1x2048xf32>
      tpu.vector_store %arg4[%c0_9, %c0_10], %9 {strides = array<i32>} : memref<1x2048xf32, #tpu.memory_space<vmem>>, vector<1x2048xf32>,
    } else {
    }
    %c0 = arith.constant 0 : index
    %c0_1 = arith.constant 0 : index
    %c0_2 = arith.constant 0 : index
    %3 = vector.load %arg3[%c0, %c0_1, %c0_2] : memref<8x1x2048xf32, #tpu.memory_space<vmem>>, vector<8x1x2048xf32>
    %cst = arith.constant 5.000000e-01 : f32
    %4 = vector.broadcast %cst : f32 to vector<8x1x2048xf32>
    %5 = arith.mulf %3, %4 : vector<8x1x2048xf32>
    %c0_3 = arith.constant 0 : index
    %c0_4 = arith.constant 0 : index
    %c0_5 = arith.constant 0 : index
    %6 = vector.load %arg5[%c0_3, %c0_4, %c0_5] : memref<8x1x2048xf32, #tpu.memory_space<vmem>>, vector<8x1x2048xf32>
    tpu.vector_store %arg5[%c0_3, %c0_4, %c0_5], %5 {strides = array<i32>} : memref<8x1x2048xf32, #tpu.memory_space<vmem>>, vector<8x1x2048xf32>,
    return
  }
  func.func @transform_0(%arg0: i32, %arg1: i32) -> (i32, i32) {
    %c0_i32 = arith.constant 0 : i32
    %c0_i32_0 = arith.constant 0 : i32
    return %arg0, %c0_i32 : i32, i32
  }
  func.func @transform_1(%arg0: i32, %arg1: i32) -> (i32, i32, i32) {
    %c0_i32 = arith.constant 0 : i32
    %c0_i32_0 = arith.constant 0 : i32
    return %arg1, %arg0, %c0_i32 : i32, i32, i32
  }
  func.func @transform_2(%arg0: i32, %arg1: i32) -> (i32, i32) {
    %c0_i32 = arith.constant 0 : i32
    %c0_i32_0 = arith.constant 0 : i32
    return %arg0, %c0_i32 : i32, i32
  }
  func.func @transform_3(%arg0: i32, %arg1: i32) -> (i32, i32, i32) {
    %c0_i32 = arith.constant 0 : i32
    %c0_i32_0 = arith.constant 0 : i32
    return %arg1, %arg0, %c0_i32 : i32, i32, i32
  }
}

</mosaic_0001>

<bundles_post_ra>
// kernel: _relaxed_scale_fwd.1
= control target key start
LH: loop header
LB: loop body
LE: loop exit
PB: predicated region body
PF: predicated region fallthrough
CT: control target
= control target key end

     0   :  { %s207_s0 = inlined_call_operand.vmem [shape: f32[1,2048], index: 0, kind: input, shape index: {}, may-alias: {0,2}]   ;;  %s208_s1 = inlined_call_operand.vmem [shape: f32[8,1,2048], index: 1, kind: input, shape index: {}, may-alias: {1,3}]   ;;  %s209_s2 = inlined_call_operand.vmem [shape: f32[1,2048], index: 2, kind: output, shape index: {0}, may-alias: {0,2}]   ;;  %s210_s3 = inlined_call_operand.vmem [shape: f32[8,1,2048], index: 3, kind: output, shape index: {1}, may-alias: {1,3}]  }
   0x1   :  { %v17_v0 = vld [vmem:[%s207_s0] sm:$0xff]  ;;  %v18_v1 = vld [vmem:[%s207_s0 + $0x8] sm:$0xff]  ;;  %v25_v7 = vld [vmem:[%s208_s1 + $0x10] sm:$0xff] }
   0x2   :  { %v23_v2 = vld [vmem:[%s208_s1] sm:$0xff]  ;;  %v19_v3 = vmul.f32 0.5, %v17_v0  ;;  %v20_v4 = vmul.f32 0.5, %v18_v1  ;;  %v24_v6 = vld [vmem:[%s208_s1 + $0x8] sm:$0xff]  ;;  %v26_v8 = vld [vmem:[%s208_s1 + $0x18] sm:$0xff]  ;;  %v41_v10 = vmul.f32 0.5, %v25_v7 }
   0x3   :  { %v39_v5 = vmul.f32 0.5, %v23_v2  ;;  %v40_v9 = vmul.f32 0.5, %v24_v6  ;;  %v42_v11 = vmul.f32 0.5, %v26_v8  ;;  %v27_v12 = vld [vmem:[%s208_s1 + $0x20] sm:$0xff]  ;;  %v28_v13 = vld [vmem:[%s208_s1 + $0x28] sm:$0xff]  ;;  %v29_v14 = vld [vmem:[%s208_s1 + $0x30] sm:$0xff] }
   0x4   :  { %21 = vst [vmem:[%s209_s2] sm:$0xff] %v19_v3  ;;  %22 = vst [vmem:[%s209_s2 + $0x8] sm:$0xff] %v20_v4  ;;  %v43_v15 = vmul.f32 0.5, %v27_v12  ;;  %v44_v16 = vmul.f32 0.5, %v28_v13  ;;  %v45_v17 = vmul.f32 0.5, %v29_v14 }
   0x5   :  { %55 = vst [vmem:[%s210_s3] sm:$0xff] %v39_v5 }
   0xc   :  { %v30_v18 = vld [vmem:[%s208_s1 + $0x38] sm:$0xff]  ;;  %v31_v19 = vld [vmem:[%s208_s1 + $0x40] sm:$0xff]  ;;  %v32_v20 = vld [vmem:[%s208_s1 + $0x48] sm:$0xff] }
   0xd   :  { %56 = vst [vmem:[%s210_s3 + $0x8] sm:$0xff] %v40_v9  ;;  %57 = vst [vmem:[%s210_s3 + $0x10] sm:$0xff] %v41_v10  ;;  %v46_v21 = vmul.f32 0.5, %v30_v18  ;;  %v47_v22 = vmul.f32 0.5, %v31_v19  ;;  %v48_v23 = vmul.f32 0.5, %v32_v20 }
   0xe   :  { %58 = vst [vmem:[%s210_s3 + $0x18] sm:$0xff] %v42_v11 }
  0x15   :  { %v33_v24 = vld [vmem:[%s208_s1 + $0x50] sm:$0xff]  ;;  %v34_v25 = vld [vmem:[%s208_s1 + $0x58] sm:$0xff]  ;;  %v35_v26 = vld [vmem:[%s208_s1 + $0x60] sm:$0xff] }
  0x16   :  { %59 = vst [vmem:[%s210_s3 + $0x20] sm:$0xff] %v43_v15  ;;  %60 = vst [vmem:[%s210_s3 + $0x28] sm:$0xff] %v44_v16  ;;  %v49_v27 = vmul.f32 0.5, %v33_v24  ;;  %v50_v28 = vmul.f32 0.5, %v34_v25  ;;  %v51_v29 = vmul.f32 0.5, %v35_v26 }
  0x17   :  { %61 = vst [vmem:[%s210_s3 + $0x30] sm:$0xff] %v45_v17 }
  0x1e   :  { %v36_v30 = vld [vmem:[%s208_s1 + $0x68] sm:$0xff]  ;;  %v37_v31 = vld [vmem:[%s208_s1 + $0x70] sm:$0xff]  ;;  %v38_v32 = vld [vmem:[%s208_s1 + $0x78] sm:$0xff] }
  0x1f   :  { %62 = vst [vmem:[%s210_s3 + $0x38] sm:$0xff] %v46_v21  ;;  %63 = vst [vmem:[%s210_s3 + $0x40] sm:$0xff] %v47_v22  ;;  %v52_v33 = vmul.f32 0.5, %v36_v30  ;;  %v53_v34 = vmul.f32 0.5, %v37_v31  ;;  %v54_v35 = vmul.f32 0.5, %v38_v32 }
  0x20   :  { %64 = vst [vmem:[%s210_s3 + $0x48] sm:$0xff] %v48_v23  ;;  %65 = vst [vmem:[%s210_s3 + $0x50] sm:$0xff] %v49_v27 }
  0x21   :  { %66 = vst [vmem:[%s210_s3 + $0x58] sm:$0xff] %v50_v28  ;;  %67 = vst [vmem:[%s210_s3 + $0x60] sm:$0xff] %v51_v29 }
  0x22   :  { %68 = vst [vmem:[%s210_s3 + $0x68] sm:$0xff] %v52_v33  ;;  %69 = vst [vmem:[%s210_s3 + $0x70] sm:$0xff] %v53_v34 }
  0x23   :  { %70 = vst [vmem:[%s210_s3 + $0x78] sm:$0xff] %v54_v35 }

</bundles_post_ra>
